<compile_context>
chip_gen: v5e
topology: v5e:2x2
jax: 0.10.0
libtpu: 0.0.40
codegen_flags: <defaults>
</compile_context>

<pallas_src>
import math
import numpy as np

import jax
import jax.numpy as jnp
from jax.experimental import pallas as pl
from jax.experimental.pallas import tpu as pltpu


# ----------------------------- static configuration -----------------------------
BATCH = 16                               # small, but exercises the batch grid
TB = 8                                   # batch tile (f32 sublane multiple)
DIM_IN = 16                              # dimension_in
PERIODIC_IDX = (2, 5)                    # periodic_indices
PERIODIC_LIMITS = (-1.0, 1.0)            # (lower, upper)
HIDDEN_SIZES = (32, 32)                  # dimensions_hidden (sequence form)
OUT_PER_DIM = 2                          # AffineTransformer.n_parameters_per_input

DIM_LIFTED = DIM_IN + len(PERIODIC_IDX)  # MADE conditioner input dimension (18)
DIM_OUT_COND = OUT_PER_DIM * DIM_IN      # MADE conditioner output dimension (32)
LOW = float(PERIODIC_LIMITS[0])
PERIOD_SCALE = 2.0 * math.pi / (PERIODIC_LIMITS[1] - PERIODIC_LIMITS[0])

# Packed-parameter slab layout (rows; columns = 32 = H1 = H2 = DIM_OUT_COND).
N_FEAT_CAT = 3 * DIM_IN                  # [x | cos | sin] -> 48
H1, H2 = HIDDEN_SIZES
R_W1 = 0                                 # rows   0: 48  folded+masked W1
R_W2 = R_W1 + N_FEAT_CAT                 # rows  48: 80  masked W2
R_W3 = R_W2 + H1                         # rows  80:112  masked W3
R_B1 = R_W3 + H2                         # row  112      b1 (8-aligned)
R_B2 = R_B1 + 8                          # row  120      b2
R_B3 = R_B2 + 8                          # row  128      b3
P_ROWS = R_B3 + 8                        # 136 rows total (multiple of 8)
P_COLS = DIM_OUT_COND                    # 32
OUT_W = 128                              # lane-dense output slab width

assert H1 == H2 == DIM_OUT_COND == P_COLS, "packed slab assumes uniform width 32"


# ------------------------- parameter / mask construction ------------------------
def build_lift_matrices():
    """0/1 scatter matrices implementing _LiftPeriodic as three matmuls.

    x_lifted = x @ S_id + cos((x-low)*s) @ S_cos + sin((x-low)*s) @ S_sin
    reproduces _LiftPeriodic.forward exactly.  Also returns the MADE input
    degrees of the lifted features (periodic blocks have size 2).
    """
    per = set(PERIODIC_IDX)
    s_id = np.zeros((DIM_IN, DIM_LIFTED), np.float32)
    s_cos = np.zeros((DIM_IN, DIM_LIFTED), np.float32)
    s_sin = np.zeros((DIM_IN, DIM_LIFTED), np.float32)
    lifted_in_degrees = []
    shift = 0
    for i in range(DIM_IN):
        j = i + shift
        if i in per:
            s_cos[i, j] = 1.0
            s_sin[i, j + 1] = 1.0
            lifted_in_degrees.extend([i, i])   # cos/sin share the block degree
            shift += 1
        else:
            s_id[i, j] = 1.0
            lifted_in_degrees.append(i)
    return s_id, s_cos, s_sin, np.asarray(lifted_in_degrees)


def build_made_masks(in_degrees):
    """Binary MADE masks, oriented (in_features, out_features) for x @ W."""
    n_blocks = DIM_IN   # one block per non-conditioning input feature
    # TODO(synk): hidden-node degrees assigned round-robin over 0..n_blocks-2
    # (standard MADE motif; tfep's default motif follows the input ordering).
    motif = np.arange(n_blocks - 1)
    masks, prev = [], in_degrees
    for h in HIDDEN_SIZES:
        deg = motif[np.arange(h) % len(motif)]
        masks.append((deg[None, :] >= prev[:, None]).astype(np.float32))
        prev = deg
    # Output layout matches _run_conditioner's reshape (batch, 2, DIM_IN):
    # first DIM_IN outputs = shift, next DIM_IN = log_scale.
    out_degrees = np.tile(np.arange(n_blocks), OUT_PER_DIM)
    masks.append((out_degrees[None, :] > prev[:, None]).astype(np.float32))
    return masks


def init_params(key):
    """Deterministic synthetic MADE weights/biases (weight_norm folded in)."""
    dims = [DIM_LIFTED, *HIDDEN_SIZES, DIM_OUT_COND]
    keys = jax.random.split(key, 2 * (len(dims) - 1))
    ws, bs = [], []
    for l in range(len(dims) - 1):
        ws.append(0.1 * jax.random.normal(keys[2 * l], (dims[l], dims[l + 1]), jnp.float32))
        bs.append(0.1 * jax.random.normal(keys[2 * l + 1], (1, dims[l + 1]), jnp.float32))
    return ws, bs


def pack_params(lift_mats, masked_ws, bs):
    """Fold the lift scatter into W1 and pack everything into one VMEM slab."""
    s_id, s_cos, s_sin = (np.asarray(m) for m in lift_mats)
    w1m, w2m, w3m = (np.asarray(w) for w in masked_ws)
    b1, b2, b3 = (np.asarray(b)[0] for b in bs)
    # Lift folded into the first masked layer: (48, 32)
    w1_cat = np.concatenate([s_id @ w1m, s_cos @ w1m, s_sin @ w1m], axis=0)
    slab = np.zeros((P_ROWS, P_COLS), np.float32)
    slab[R_W1:R_W1 + N_FEAT_CAT] = w1_cat
    slab[R_W2:R_W2 + H1] = w2m
    slab[R_W3:R_W3 + H2] = w3m
    slab[R_B1] = b1
    slab[R_B2] = b2
    slab[R_B3] = b3
    return jnp.asarray(slab)


# ----------------------------------- kernel -------------------------------------
def _maf_kernel(x_ref, p_ref, out_ref):
    x = x_ref[...]                                                   # (TB, DIM_IN) f32

    # _LiftPeriodic folded into layer 1: build [x | cos(xs) | sin(xs)] once.
    xs = (x - LOW) * PERIOD_SCALE
    feat = jnp.concatenate([x, jnp.cos(xs), jnp.sin(xs)], axis=-1)   # (TB, 48)

    # Packed-parameter slab slices (static, sublane-aligned offsets).
    w1 = p_ref[R_W1:R_W1 + N_FEAT_CAT, :]
    w2 = p_ref[R_W2:R_W2 + H1, :]
    w3 = p_ref[R_W3:R_W3 + H2, :]
    b1 = p_ref[R_B1:R_B1 + 1, :]
    b2 = p_ref[R_B2:R_B2 + 1, :]
    b3 = p_ref[R_B3:R_B3 + 1, :]

    # MADE conditioner: masked MLP, exactly 3 MXU matmuls (masks pre-applied).
    # TODO(synk): tfep's MADE hidden nonlinearity assumed to be tanh.
    h = jnp.tanh(jnp.dot(feat, w1, preferred_element_type=jnp.float32) + b1)
    h = jnp.tanh(jnp.dot(h, w2, preferred_element_type=jnp.float32) + b2)
    cond = jnp.dot(h, w3, preferred_element_type=jnp.float32) + b3   # (TB, 32)

    # Conditioner output viewed as (batch, 2, DIM_IN): [:,0]=shift, [:,1]=log_scale.
    shift = cond[:, :DIM_IN]
    log_scale = cond[:, DIM_IN:2 * DIM_IN]

    # AffineTransformer: y = x * exp(log_scale) + shift ; log|det J| = sum log_scale.
    y = x * jnp.exp(log_scale) + shift                               # (TB, 16)
    ldj = jnp.sum(log_scale, axis=-1, keepdims=True)                 # (TB, 1)

    # Single lane-dense (TB, 128) store: [ y | ldj | zero pad ].
    pad = jnp.zeros((x.shape[0], OUT_W - DIM_IN - 1), jnp.float32)
    out_ref[...] = jnp.concatenate([y, ldj, pad], axis=-1)


def maf_forward(x, params_slab):
    b = x.shape[0]
    out = pl.pallas_call(
        _maf_kernel,
        out_shape=jax.ShapeDtypeStruct((b, OUT_W), jnp.float32),
        grid_spec=pltpu.PrefetchScalarGridSpec(
            num_scalar_prefetch=0,
            grid=(pl.cdiv(b, TB),),
            in_specs=[
                pl.BlockSpec((TB, DIM_IN), lambda i: (i, 0)),        # batch-tiled x
                pl.BlockSpec((P_ROWS, P_COLS), lambda i: (0, 0)),    # resident params
            ],
            out_specs=pl.BlockSpec((TB, OUT_W), lambda i: (i, 0)),
        ),
        compiler_params=pltpu.CompilerParams(
            dimension_semantics=("parallel",),          # megacore sharding on v7x
            vmem_limit_bytes=32 * 1024 * 1024,          # safe on v7x's 64 MiB VMEM
        ),
    )(x, params_slab)
    return out[:, :DIM_IN], out[:, DIM_IN]


# ------------------------------ pure-JAX reference -------------------------------
def maf_reference(x, lift_mats, masked_ws, bs):
    """Un-folded reference (lift as scatter matmuls) to validate the folding."""
    sid, scos, ssin = lift_mats
    xs = (x - LOW) * PERIOD_SCALE
    xl = x @ sid + jnp.cos(xs) @ scos + jnp.sin(xs) @ ssin
    h = jnp.tanh(xl @ masked_ws[0] + bs[0])
    h = jnp.tanh(h @ masked_ws[1] + bs[1])
    cond = h @ masked_ws[2] + bs[2]
    shift, log_scale = cond[:, :DIM_IN], cond[:, DIM_IN:]
    return x * jnp.exp(log_scale) + shift, jnp.sum(log_scale, axis=-1)


# ------------------------------------- main --------------------------------------
if __name__ == "__main__":
    key = jax.random.PRNGKey(0)
    k_x, k_p = jax.random.split(key)

    s_id, s_cos, s_sin, lifted_degrees = build_lift_matrices()
    masks = build_made_masks(lifted_degrees)
    ws, bs = init_params(k_p)
    masked_ws = [w * jnp.asarray(m) for w, m in zip(ws, masks)]
    lift_mats = (jnp.asarray(s_id), jnp.asarray(s_cos), jnp.asarray(s_sin))

    params_slab = pack_params(lift_mats, masked_ws, bs)
    x = jax.random.normal(k_x, (BATCH, DIM_IN), jnp.float32)

    y, log_det_J = maf_forward(x, params_slab)
    jax.block_until_ready((y, log_det_J))

    y_ref, ldj_ref = maf_reference(x, lift_mats, masked_ws, bs)
    assert y.shape == (BATCH, DIM_IN) and log_det_J.shape == (BATCH,)
    np.testing.assert_allclose(np.asarray(y), np.asarray(y_ref), rtol=1e-5, atol=1e-5)
    np.testing.assert_allclose(np.asarray(log_det_J), np.asarray(ldj_ref), rtol=1e-5, atol=1e-5)

    print("KERNEL_OK")
</pallas_src>

<mosaic_0001>
module attributes {stable_mosaic.version = 11 : i64} {
  func.func @_maf_kernel(%arg0: i32, %arg1: memref<8x16xf32, #tpu.memory_space<vmem>>, %arg2: memref<136x32xf32, #tpu.memory_space<vmem>>, %arg3: memref<8x128xf32, #tpu.memory_space<vmem>>) attributes {dimension_semantics = [#tpu.dimension_semantics<parallel>], iteration_bounds = array<i64: 2>, scalar_prefetch = 0 : i64, scratch_operands = 0 : i64, tpu.core_type = #tpu.core_type<tc>, window_params = [{transform_indices = @transform_0, window_bounds = array<i64: 8, 16>}, {pipeline_mode = #tpu.pipeline_mode<synchronous>, transform_indices = @transform_1, window_bounds = array<i64: 136, 32>}, {transform_indices = @transform_2, window_bounds = array<i64: 8, 128>}]} {
    %c0 = arith.constant 0 : index
    %c0_0 = arith.constant 0 : index
    %0 = vector.load %arg1[%c0, %c0_0] : memref<8x16xf32, #tpu.memory_space<vmem>>, vector<8x16xf32>
    %cst = arith.constant -1.000000e+00 : f32
    %1 = vector.broadcast %cst : f32 to vector<8x16xf32>
    %2 = arith.subf %0, %1 : vector<8x16xf32>
    %cst_1 = arith.constant 3.14159274 : f32
    %3 = vector.broadcast %cst_1 : f32 to vector<8x16xf32>
    %4 = arith.mulf %2, %3 : vector<8x16xf32>
    %5 = math.cos %4 : vector<8x16xf32>
    %6 = math.sin %4 : vector<8x16xf32>
    %7 = tpu.concatenate %0, %5, %6 in 1 : vector<8x16xf32>, vector<8x16xf32>, vector<8x16xf32> -> vector<8x48xf32>
    %c0_2 = arith.constant 0 : index
    %c0_3 = arith.constant 0 : index
    %8 = vector.load %arg2[%c0_2, %c0_3] : memref<136x32xf32, #tpu.memory_space<vmem>>, vector<48x32xf32>
    %c48 = arith.constant 48 : index
    %c0_4 = arith.constant 0 : index
    %9 = vector.load %arg2[%c48, %c0_4] : memref<136x32xf32, #tpu.memory_space<vmem>>, vector<32x32xf32>
    %c80 = arith.constant 80 : index
    %c0_5 = arith.constant 0 : index
    %10 = vector.load %arg2[%c80, %c0_5] : memref<136x32xf32, #tpu.memory_space<vmem>>, vector<32x32xf32>
    %c112 = arith.constant 112 : index
    %c0_6 = arith.constant 0 : index
    %11 = vector.load %arg2[%c112, %c0_6] : memref<136x32xf32, #tpu.memory_space<vmem>>, vector<1x32xf32>
    %c120 = arith.constant 120 : index
    %c0_7 = arith.constant 0 : index
    %12 = vector.load %arg2[%c120, %c0_7] : memref<136x32xf32, #tpu.memory_space<vmem>>, vector<1x32xf32>
    %c128 = arith.constant 128 : index
    %c0_8 = arith.constant 0 : index
    %13 = vector.load %arg2[%c128, %c0_8] : memref<136x32xf32, #tpu.memory_space<vmem>>, vector<1x32xf32>
    %cst_9 = arith.constant dense<0.000000e+00> : vector<8x32xf32>
    %14 = tpu.matmul %7, %8, %cst_9 {dimension_numbers = #tpu.dot_dimension_numbers<[1], [0], [0], [1], [0, 0, 1, 1], [], []>} : vector<8x48xf32>, vector<48x32xf32>, vector<8x32xf32> -> vector<8x32xf32>
    %15 = vector.broadcast %11 : vector<1x32xf32> to vector<8x32xf32>
    %16 = arith.addf %14, %15 : vector<8x32xf32>
    %17 = math.tanh %16 : vector<8x32xf32>
    %cst_10 = arith.constant dense<0.000000e+00> : vector<8x32xf32>
    %18 = tpu.matmul %17, %9, %cst_10 {dimension_numbers = #tpu.dot_dimension_numbers<[1], [0], [0], [1], [0, 0, 1, 1], [], []>} : vector<8x32xf32>, vector<32x32xf32>, vector<8x32xf32> -> vector<8x32xf32>
    %19 = vector.broadcast %12 : vector<1x32xf32> to vector<8x32xf32>
    %20 = arith.addf %18, %19 : vector<8x32xf32>
    %21 = math.tanh %20 : vector<8x32xf32>
    %cst_11 = arith.constant dense<0.000000e+00> : vector<8x32xf32>
    %22 = tpu.matmul %21, %10, %cst_11 {dimension_numbers = #tpu.dot_dimension_numbers<[1], [0], [0], [1], [0, 0, 1, 1], [], []>} : vector<8x32xf32>, vector<32x32xf32>, vector<8x32xf32> -> vector<8x32xf32>
    %23 = vector.broadcast %13 : vector<1x32xf32> to vector<8x32xf32>
    %24 = arith.addf %22, %23 : vector<8x32xf32>
    %25 = vector.extract_strided_slice %24 {offsets = [0, 0], sizes = [8, 16], strides = [1, 1]} : vector<8x32xf32> to vector<8x16xf32>
    %26 = vector.extract_strided_slice %24 {offsets = [0, 16], sizes = [8, 16], strides = [1, 1]} : vector<8x32xf32> to vector<8x16xf32>
    %27 = math.exp %26 : vector<8x16xf32>
    %28 = arith.mulf %0, %27 : vector<8x16xf32>
    %29 = arith.addf %28, %25 : vector<8x16xf32>
    %cst_12 = arith.constant dense<0.000000e+00> : vector<8xf32>
    %30 = vector.multi_reduction <add>, %26, %cst_12 [1] : vector<8x16xf32> to vector<8xf32>
    %31 = vector.shape_cast %30 : vector<8xf32> to vector<8x1xf32>
    %cst_13 = arith.constant 0.000000e+00 : f32
    %32 = vector.broadcast %cst_13 : f32 to vector<8x111xf32>
    %33 = tpu.concatenate %29, %31, %32 in 1 : vector<8x16xf32>, vector<8x1xf32>, vector<8x111xf32> -> vector<8x128xf32>
    %c0_14 = arith.constant 0 : index
    %c0_15 = arith.constant 0 : index
    %34 = vector.load %arg3[%c0_14, %c0_15] : memref<8x128xf32, #tpu.memory_space<vmem>>, vector<8x128xf32>
    tpu.vector_store %arg3[%c0_14, %c0_15], %33 {strides = array<i32>} : memref<8x128xf32, #tpu.memory_space<vmem>>, vector<8x128xf32>,
    return
  }
  func.func @transform_0(%arg0: i32) -> (i32, i32) {
    %c0_i32 = arith.constant 0 : i32
    %c0_i32_0 = arith.constant 0 : i32
    return %arg0, %c0_i32 : i32, i32
  }
  func.func @transform_1(%arg0: i32) -> (i32, i32) {
    %c0_i32 = arith.constant 0 : i32
    %c0_i32_0 = arith.constant 0 : i32
    %c0_i32_1 = arith.constant 0 : i32
    return %c0_i32, %c0_i32_0 : i32, i32
  }
  func.func @transform_2(%arg0: i32) -> (i32, i32) {
    %c0_i32 = arith.constant 0 : i32
    %c0_i32_0 = arith.constant 0 : i32
    return %arg0, %c0_i32 : i32, i32
  }
}

</mosaic_0001>

<bundles_post_ra>
// kernel: tpu_custom_call.1
= control target key start
LH: loop header
LB: loop body
LE: loop exit
PB: predicated region body
PF: predicated region fallthrough
CT: control target
= control target key end

     0   :  { %7 = vsyncpa [#allocation3], 0  ;;  %s1009_s0 = inlined_call_operand.vmem [shape: f32[16,16], index: 0, kind: input, shape index: {}]   ;;  %s1010_s1 = inlined_call_operand.vmem [shape: f32[136,32], index: 1, kind: input, shape index: {}]   ;;  %s1011_s2 = inlined_call_operand.hbm [shape: f32[16,128], index: 2, kind: output, shape index: {}]  }
   0x1   :  { %9 = vsyncpa [#allocation3 + $0x1], 0  ;;  %s816_s9 = smov 0   ;;  %s818_s10 = smov 0  }
   0x2   :  { %s820_s11 = smov 0   ;;  %s822_s12 = smov 0  }
   0x3 LB: > { %s837_s13 = sadd.s32 4294967295, %s789_s12   ;;  %s649_s14 = sadd.s32 4294967294, %s789_s12   ;;  %s789_s12 = sphi %s822_s12, %s1017_s12   ;;  %s785_s11 = sphi %s820_s11, %s1016_s11   ;;  %s781_s10 = sphi %s818_s10, %s1015_s10   ;;  %s777_s9 = sphi %s816_s9, %s1014_s9  }
   0x4   : > { %s841_s15 = sadd.s32 1, %s789_s12   ;;  %s69_s16 = sadd.s32 1, %s785_s11 }
   0x5   : > { %s66_s17 = ssub.s32 %s789_s12, %s841_s15  ;;  %p79_p0 = scmp.ne.s32.totalorder %s785_s11, %s781_s10 }
   0x6   : > { %p67_p1 = scmp.eq.s32.totalorder %s66_s17, 0  ;;  %p80_p2 = scmp.eq.s32.totalorder %s837_s13, 1 }
   0x7   : > { %p85_p3 = scmp.ne.s32.totalorder %s781_s10, %s777_s9  ;;  %p86_p4 = scmp.eq.s32.totalorder %s649_s14, 1 }
   0x8   : > { %s852_s18 = scalar_select %p67_p1, %s785_s11, %s69_s16  }
   0x9   : > { %p854_p5 = por %p80_p2, %p79_p0  ;;  %p858_p6 = por %p86_p4, %p85_p3 }
   0xa   : > { %p652_p7 = scmp.ge.s32.totalorder %s789_s12, 1  ;;  %p114_p8 = scmp.lt.s32.totalorder %s789_s12, 3 }
   0xc   : > { %p115_p9 = pnand %p652_p7, %p114_p8 }
   0xd   : > { %p135_p10 = scmp.lt.s32.totalorder (!%p115_p9), %s837_s13, 1  ;;  %s798_s28 = smov (!%p115_p9), 16  }
   0xe   : > { %118 = sbr.rel (%p115_p9) target bundleno = 889 (0x379), region = 28  ;;  %s799_s29 = smov (!%p115_p9), 32  }
   0xf   : > { %s800_s24 = smov (!%p115_p9), 112   ;;  %s666_s27 = sshll.u32 (!%p115_p9), %s837_s13, 3 }
  0x10   : > { %s585_s30 = scalar_lea.hbm (!%p115_p9), %s1011_s2, %s666_s27  ;;  %s747_s16 = scalar_lea.hbm (!%p115_p9), %s1011_s2, 16 }
  0x11   : > { %s589_s5 = sshll.u32 (!%p115_p9), %s585_s30, 4  ;;  %s590_s5 = int_to_ptr.hbm [resolvable:$true] %s589_s5 }
  0x12   : > { %s741_s6 = sshra.s32 (!%p115_p9), %s590_s5, 4  ;;  %s742_s6 = int_to_ptr.hbm [resolvable:$true] %s741_s6 }
  0x13   : > { %s136_s21 = scalar_select %p135_p10, %s837_s13, 1  ;;  %v791_v14 = vmov 683565275   ;;  %v792_v16 = vmov 2475754826  }
  0x14   : > { %v793_v18 = vmov 2131351028   ;;  %v794_v20 = vmov 2102212464   ;;  %v795_v22 = vmov 920167782   ;;  %p748_p0 = scmp.lt.s32.totalorder %s742_s6, %s1011_s2 }
  0x15   : > { %s654_s22 = sshll.u32 %s136_s21, 3  ;;  %v796_v28 = vmov 1326507024   ;;  %s743_s7 = scalar_lea.hbm %s742_s6, 8 }
  0x16   : > { %s138_s25 = scalar_lea.vmem %s1009_s0, %s654_s22  ;;  %p744_p11 = scmp.ne.s32.totalorder %s742_s6, %s743_s7 }
  0x17   : > { %v869_v0 = vld [vmem:[%s138_s25] sm:$0xff]  ;;  %s132_s25 = sand.u32 1, %s781_s10   ;;  %p749_p1 = scmp.lt.s32.totalorder %s747_s16, %s743_s7 }
  0x18   : > { %v655_v1 = vadd.f32 1.0, %v869_v0  ;;  %s653_s26 = sshll.u32 %s132_s25, 3  ;;  %s575_s13 = scalar_lea.sflag [#allocation3], %s132_s25 }
  0x19   : > { %s134_s3 = scalar_lea.vmem [#allocation2], %s653_s26  ;;  %p745_p12 = pnand %p744_p11, %p854_p5 }
  0x1a   : > { %v872_v2 = vmul.f32 3.1415927, %v655_v1  ;;  %s587_s4 = sshll.u32 %s134_s3, 4  ;;  %p750_p2 = por %p749_p1, %p748_p0  ;;  %s588_s4 = int_to_ptr.vmem [resolvable:$true] %s587_s4 }
  0x1b   : > { %p746_p13 = pneg %p745_p12 }
  0x1c   : > { %v145_v3 = vand.u32 2139095040, %v872_v2  ;;  %v142_v5 = vand.u32 2147483647, %v872_v2  ;;  %vm144_vm12 = vcmp.lt.s32.totalorder %v872_v2, 0 }
  0x1d   : > { %p751_p3 = pnand %p750_p2, %p746_p13 }
  0x1e   : > { %v146_v4 = vshrl.u32 %v145_v3, 23  ;;  %v149_v8 = vand.u32 8388607, %v142_v5  ;;  %vm143_vm13 = vcmp.le.f32.partialorder %v142_v5, 0.7853982 }
  0x20   : > { %v656_v6 = vadd.s32 4294967169, %v146_v4  ;;  %v150_v11 = vor.u32 8388608, %v149_v8  ;;  %v797_v4 = vmov 0  }
  0x22   : > { %v152_v7 = vadd.s32 1, %v656_v6  ;;  %v881_v30 = vshll.u32 %v150_v11, 8 }
  0x24   : > { %vm153_vm0 = vcmp.gt.s32.totalorder %v152_v7, 0  ;;  %v191_v42 = vand.u32 65535, %v881_v30  ;;  %v192_v43 = vshrl.u32 %v881_v30, 16 }
  0x25   : > { %v154_v9 = vsel %vm153_vm0, %v152_v7, 0 }
  0x26   : > { %v156_v10 = vand.u32 31, %v154_v9  ;;  %v878_v12 = vshrl.u32 %v154_v9, 5 }
  0x28   : > { %v157_v13 = vsub.s32 32, %v156_v10  ;;  %v159_v15 = vshll.u32 %v791_v14, %v156_v10  ;;  %v162_v17 = vshll.u32 %v792_v16, %v156_v10  ;;  %v165_v19 = vshll.u32 %v793_v18, %v156_v10 }
  0x29   : > { %v168_v21 = vshll.u32 %v794_v20, %v156_v10  ;;  %v171_v23 = vshll.u32 %v795_v22, %v156_v10  ;;  %vm174_vm1 = vcmp.lt.s32.totalorder %v878_v12, 1  ;;  %vm177_vm2 = vcmp.lt.s32.totalorder %v878_v12, 4 }
  0x2a   : > { %v160_v24 = vshrl.u32 %v792_v16, %v157_v13  ;;  %v163_v25 = vshrl.u32 %v793_v18, %v157_v13  ;;  %v166_v26 = vshrl.u32 %v794_v20, %v157_v13  ;;  %v169_v27 = vshrl.u32 %v795_v22, %v157_v13 }
  0x2b   : > { %v172_v29 = vshrl.u32 %v796_v28, %v157_v13  ;;  %vm176_vm3 = vcmp.lt.s32.totalorder %v878_v12, 3  ;;  %vm175_vm4 = vcmp.lt.s32.totalorder %v878_v12, 2  ;;  %v158_v50 = vshrl.u32 %v791_v14, %v157_v13 }
  0x2c   : > { %v161_v31 = vor.u32 %v160_v24, %v159_v15  ;;  %v164_v32 = vor.u32 %v163_v25, %v162_v17  ;;  %v167_v33 = vor.u32 %v166_v26, %v165_v19  ;;  %v170_v34 = vor.u32 %v169_v27, %v168_v21 }
  0x2d   : > { %v173_v35 = vor.u32 %v172_v29, %v171_v23 }
  0x2e   : > { %v182_v36 = vsel %vm174_vm1, %v161_v31, %v164_v32  ;;  %v186_v37 = vsel %vm174_vm1, %v164_v32, %v167_v33  ;;  %v183_v38 = vsel %vm177_vm2, %v170_v34, 920167782  ;;  %v178_v63 = vsel %vm174_vm1, %v158_v50, %v161_v31 }
  0x2f   : > { %v187_v39 = vsel %vm177_vm2, %v173_v35, 1326507024  ;;  %v184_v40 = vsel %vm176_vm3, %v167_v33, %v183_v38  ;;  %v179_v3 = vsel %vm177_vm2, %v167_v33, 2102212464  ;;  %vm285_vm1 = vweird.f32 %v872_v2 }
  0x30   : > { %v188_v41 = vsel %vm176_vm3, %v170_v34, %v187_v39  ;;  %v185_v44 = vsel %vm175_vm4, %v182_v36, %v184_v40  ;;  %v180_v15 = vsel %vm176_vm3, %v164_v32, %v179_v3 }
  0x31   : > { %v189_v45 = vsel %vm175_vm4, %v186_v37, %v188_v41  ;;  %v215_v48 = vand.u32 65535, %v185_v44  ;;  %v216_v49 = vshrl.u32 %v185_v44, 16  ;;  %v181_v23 = vsel %vm175_vm4, %v178_v63, %v180_v15 }
  0x32   : > { %v193_v46 = vand.u32 65535, %v189_v45  ;;  %v194_v47 = vshrl.u32 %v189_v45, 16  ;;  %v235_v27 = vmul.u32 %v881_v30, %v181_v23 }
  0x33   : > { %v217_v54 = vmul.u32 %v215_v48, %v191_v42  ;;  %v218_v55 = vmul.u32 %v216_v49, %v191_v42  ;;  %v219_v56 = vmul.u32 %v215_v48, %v192_v43  ;;  %v220_v60 = vmul.u32 %v216_v49, %v192_v43 }
  0x34   : > { %v195_v51 = vmul.u32 %v193_v46, %v191_v42  ;;  %v196_v52 = vmul.u32 %v194_v47, %v191_v42  ;;  %v197_v53 = vmul.u32 %v193_v46, %v192_v43  ;;  %v198_v57 = vmul.u32 %v194_v47, %v192_v43 }
  0x35   : > { %v221_v61 = vshll.u32 %v218_v55, 16  ;;  %v223_v62 = vshll.u32 %v219_v56, 16  ;;  %v222_v13 = vshrl.u32 %v218_v55, 16  ;;  %v224_v19 = vshrl.u32 %v219_v56, 16 }
  0x36   : > { %v199_v58 = vshll.u32 %v196_v52, 16  ;;  %v201_v59 = vshll.u32 %v197_v53, 16  ;;  %v200_v8 = vshrl.u32 %v196_v52, 16  ;;  %v202_v16 = vshrl.u32 %v197_v53, 16  ;;  %v468_v52 = vld [vmem:[%s1010_s1 + $0x28] sm:$0xff] }
  0x37   : > { %vm225_vm6 = vc.u32 %v217_v54, %v221_v61  ;;  %v227_v7 = vadd.s32 %v221_v61, %v217_v54  ;;  %495 = vmatpush.msra.mxu0 %v468_v52 }
  0x38   : > { %vm203_vm5 = vc.u32 %v195_v51, %v199_v58  ;;  %v205_v1 = vadd.s32 %v199_v58, %v195_v51  ;;  %v226_v10 = vsel %vm225_vm6, 1, %v797_v4  ;;  %vm461_vm6 = vcmask 261120  }
  0x39   : > { %v204_v6 = vsel %vm203_vm5, 1, %v797_v4  ;;  %v228_v14 = vadd.s32 %v226_v10, %v220_v60  ;;  %vm229_vm8 = vc.u32 %v227_v7, %v223_v62  ;;  %v231_v22 = vadd.s32 %v227_v7, %v223_v62 }
  0x3a   : > { %v206_v9 = vadd.s32 %v204_v6, %v198_v57  ;;  %vm207_vm7 = vc.u32 %v205_v1, %v201_v59  ;;  %v230_v18 = vsel %vm229_vm8, 1, %v797_v4  ;;  %vm459_vm5 = vcmask 130048  }
  0x3b   : > { %v208_v11 = vsel %vm207_vm7, 1, %v797_v4  ;;  %v232_v20 = vadd.s32 %v230_v18, %v228_v14  ;;  %vm481_vm7 = vcmask 392192   ;;  %vm571_vm8 = vcmask 138240  }
  0x3c   : > { %v210_v17 = vadd.s32 %v208_v11, %v206_v9 }
  0x3d   : > { %v233_v24 = vadd.s32 %v232_v20, %v222_v13 }
  0x3e   : > { %v211_v21 = vadd.s32 %v210_v17, %v200_v8 }
  0x3f   : > { %v234_v26 = vadd.s32 %v233_v24, %v224_v19  ;;  %v467_v24 = vld [vmem:[%s1010_s1 + $0x20] sm:$0xff] }
  0x40   : > { %v212_v25 = vadd.s32 %v211_v21, %v202_v16  ;;  %496 = vmatpush.msra.mxu0 %v467_v24 }
  0x41   : > { %v238_v28 = vadd.s32 1, %v234_v26 }
  0x42   : > { %vm237_vm9 = vc.u32 %v212_v25, %v231_v22  ;;  %v236_v12 = vadd.s32 %v231_v22, %v212_v25  ;;  %v465_v25 = vld [vmem:[%s1010_s1 + $0x10] sm:$0xff] }
  0x43   : > { %v239_v29 = vsel %vm237_vm9, %v238_v28, %v234_v26  ;;  %v464_v26 = vld [vmem:[%s1010_s1 + $0x8] sm:$0xff] }
  0x44   : > { %v240_v31 = vadd.s32 %v239_v29, %v235_v27  ;;  %v463_v27 = vld [vmem:[%s1010_s1] sm:$0xff] }
  0x46   : > { %v241_v32 = vadd.s32 536870912, %v240_v31 }
  0x48   : > { %v242_v33 = vshrl.u32 %v241_v32, 30 }
  0x4a   : > { %v243_v34 = vshll.u32 %v242_v33, 30  ;;  %v266_v54 = vsub.s32 4, %v242_v33 }
  0x4c   : > { %v244_v35 = vsub.s32 %v240_v31, %v243_v34  ;;  %v267_v59 = vsel %vm144_vm12, %v266_v54, %v242_v33  ;;  %v472_v33 = vld [vmem:[%s1010_s1 + $0x48] sm:$0xff]  ;;  %v471_v34 = vld [vmem:[%s1010_s1 + $0x40] sm:$0xff] }
  0x4d   : > { %v269_v62 = vsel %vm143_vm13, 0, %v267_v59  ;;  %522 = vmatpush.msra.mxu1 %v472_v33 }
  0x4e   : > { %vm245_vm10 = vcmp.lt.s32.totalorder %v244_v35, 0  ;;  %v246_v36 = vsub.s32 0, %v244_v35  ;;  %v286_v4 = vand.u32 3, %v269_v62  ;;  %v440_v6 = vadd.s32 3, %v269_v62 }
  0x4f   : > { %523 = vmatpush.msra.mxu1 %v471_v34 }
  0x50   : > { %v247_v37 = vsel %vm245_vm10, %v246_v36, %v244_v35  ;;  %vm291_vm14 = vcmp.eq.s32.totalorder %v286_v4, 2  ;;  %v441_v11 = vand.u32 3, %v440_v6  ;;  %vm288_vm15 = vcmp.eq.s32.totalorder %v286_v4, 0  ;;  %v469_v36 = vld [vmem:[%s1010_s1 + $0x30] sm:$0xff] }
  0x51   : > { %v248_v38 = vclz %v247_v37  ;;  %vm287_vm0 = vcmp.lt.s32.totalorder %v286_v4, 2  ;;  %v718_v37 = vld [vmem:[%s1010_s1 + $0x70] ss:$0 sm:$0xff] }
  0x52   : > { %vm443_vm2 = vcmp.eq.s32.totalorder %v441_v11, 0  ;;  %vm446_vm3 = vcmp.eq.s32.totalorder %v441_v11, 2  ;;  %vm442_vm4 = vcmp.lt.s32.totalorder %v441_v11, 2 }
  0x53   : > { %v657_v39 = vadd.s32 4294967294, %v248_v38 }
  0x55   : > { %vm658_vm11 = vcmp.lt.s32.totalorder %v657_v39, 0 }
  0x56   : > { %v251_v40 = vsel %vm658_vm11, 0, %v657_v39 }
  0x57   : > { %v252_v41 = vsub.s32 32, %v251_v40  ;;  %v253_v42 = vshll.u32 %v244_v35, %v251_v40  ;;  %v256_v43 = vsub.s32 4294967266, %v251_v40  ;;  %v470_v35 = vld [vmem:[%s1010_s1 + $0x38] sm:$0xff]  ;;  %v476_v40 = vld [vmem:[%s1010_s1 + $0x68] sm:$0xff] }
  0x58   : > { %524 = vmatpush.msra.mxu1 %v470_v35  ;;  %547 = vmatpush.msra.mxu2 %v476_v40 }
  0x59   : > { %v254_v30 = vshrl.u32 %v236_v12, %v252_v41  ;;  %v257_v44 = vadd.s32 127, %v256_v43  ;;  %v475_v41 = vld [vmem:[%s1010_s1 + $0x60] sm:$0xff]  ;;  %v473_v43 = vld [vmem:[%s1010_s1 + $0x50] sm:$0xff] }
  0x5a   : > { %525 = vmatpush.msra.mxu1 %v469_v36  ;;  %548 = vmatpush.msra.mxu2 %v475_v41 }
  0x5b   : > { %v255_v45 = vor.u32 %v254_v30, %v253_v42  ;;  %v258_v46 = vshll.u32 %v257_v44, 23  ;;  %v474_v42 = vld [vmem:[%s1010_s1 + $0x58] sm:$0xff] }
  0x5c   : > { %549 = vmatpush.msra.mxu2 %v474_v42  ;;  %v719_v30 = vld [vmem:[%s1010_s1 + $0x78] ss:$0 sm:$0xff] }
  0x5d   : > { %v259_v47 = vor.u32 4788187, %v258_v46  ;;  %v262_v48 = vcvt.s32.f32 %v255_v45 }
  0x5e   : > { %550 = vmatpush.msra.mxu2 %v473_v43 }
  0x5f   : > { %v260_v49 = vand.u32 2147483647, %v259_v47  ;;  %v720_v47 = vld [vmem:[%s1010_s1 + $0x80] ss:$0 sm:$0xff] }
  0x61   : > { %v263_v50 = vmul.f32 %v262_v48, %v260_v49 }
  0x63   : > { %v264_v51 = vxor.u32 2147483648, %v263_v50 }
  0x65   : > { %v265_v53 = vsel %vm144_vm12, %v264_v51, %v263_v50 }
  0x66   : > { %v268_v55 = vsel %vm143_vm13, %v872_v2, %v265_v53  ;;  %v466_v2 = vld [vmem:[%s1010_s1 + $0x18] sm:$0xff] }
  0x67   : > { %v270_v56 = vmul.f32 %v268_v55, %v268_v55  ;;  %497 = vmatpush.msra.mxu0 %v466_v2 }
  0x69   : > { %v271_v57 = vmul.f32 -0.001358992, %v270_v56  ;;  %v278_v58 = vmul.f32 -0.00019511016, %v270_v56  ;;  %498 = vmatpush.msra.mxu0 %v465_v25 }
  0x6b   : > { %v272_v60 = vadd.f32 0.041655596, %v271_v57  ;;  %v279_v61 = vadd.f32 0.008332121, %v278_v58  ;;  %499 = vmatpush.msra.mxu0 %v464_v26 }
  0x6d   : > { %v273_v63 = vmul.f32 %v272_v60, %v270_v56  ;;  %v280_v1 = vmul.f32 %v279_v61, %v270_v56  ;;  %500 = vmatpush.msra.mxu0 %v463_v27 }
  0x6f   : > { %v274_v5 = vadd.f32 -0.4999988, %v273_v63  ;;  %v281_v3 = vadd.f32 -0.16666654, %v280_v1 }
  0x71   : > { %v275_v7 = vmul.f32 %v274_v5, %v270_v56  ;;  %v282_v8 = vmul.f32 %v281_v3, %v270_v56 }
  0x73   : > { %v276_v9 = vadd.f32 1.0, %v275_v7  ;;  %v283_v10 = vadd.f32 1.0, %v282_v8 }
  0x75   : > { %v284_v13 = vmul.f32 %v283_v10, %v268_v55  ;;  %v292_v14 = vxor.u32 2147483648, %v276_v9 }
  0x77   : > { %v289_v15 = vxor.u32 2147483648, %v284_v13  ;;  %v293_v16 = vsel %vm291_vm14, %v292_v14, %v284_v13  ;;  %v448_v21 = vsel %vm446_vm3, %v292_v14, %v284_v13 }
  0x79   : > { %v290_v17 = vsel %vm288_vm15, %v276_v9, %v289_v15  ;;  %v445_v20 = vsel %vm443_vm2, %v276_v9, %v289_v15 }
  0x7a   : > { %v294_v18 = vsel %vm287_vm0, %v290_v17, %v293_v16  ;;  %v449_v22 = vsel %vm442_vm4, %v445_v20, %v448_v21 }
  0x7b   : > { %v295_v19 = vsel %vm285_vm1, nan, %v294_v18  ;;  %v450_v23 = vsel %vm285_vm1, nan, %v449_v22 }
  0x7c   : > { %452 = vrot.lane.b32.xlu0 %v295_v19, %s798_s28 }
  0x84   : > { %456 = vrot.lane.b32.xlu0 %v450_v23, %s799_s29 }
  0xee   : > { %v453_v28 = vpop.permute.xlu0 %452 }
  0xef   : > { %v460_v29 = vsel %vm459_vm5, %v869_v0, %v453_v28 }
  0xf6   : > { %v457_v31 = vpop.permute.xlu0 %456 }
  0xf7   : > { %v462_v32 = vsel %vm461_vm6, %v460_v29, %v457_v31 }
  0xf8   : > { %662 = vmatmul.msk.f32.vlgmr.msra.gmra.mxu0 %vm481_vm7, %v462_v32 }
 0x175   : > { %v502_v38 = vpop.f32.mrf.mxu0 }
 0x176   : > { %v503_v39 = vadd.f32 %v718_v37, %v502_v38 }
 0x178   : > { %721 = vtanh.f32 %v503_v39 }
 0x17e   : > { %v722_v12 = vpop.eup %721 }
 0x17f   : > { %663 = vmatmul.msk.f32.vlgmr.msra.gmra.mxu1 %vm461_vm6, %v722_v12 }
 0x1fc   : > { %v527_v44 = vpop.f32.mrf.mxu1 }
 0x1fd   : > { %v528_v45 = vadd.f32 %v719_v30, %v527_v44 }
 0x1ff   : > { %723 = vtanh.f32 %v528_v45 }
 0x205   : > { %v724_v46 = vpop.eup %723 }
 0x206   : > { %664 = vmatmul.msk.f32.vlgmr.msra.gmra.mxu2 %vm461_vm6, %v724_v46 }
 0x289   : > { %v552_v48 = vpop.f32.mrf.mxu2 }
 0x28a   : > { %v553_v49 = vadd.f32 %v720_v47, %v552_v48 }
 0x28c   : > { %v555_v50 = vmul.f32 1.442695, %v553_v49  ;;  %564 = vrot.lane.b32.xlu1 %v553_v49, %s800_s24 }
 0x28e   : > { %725 = vpow2.f32 %v555_v50 }
 0x294   : > { %v726_v51 = vpop.eup %725 }
 0x295   : > { %558 = vrot.lane.b32.xlu1 %v726_v51, %s800_s24 }
 0x2fe   : > { %v565_v52 = vpop.permute.xlu1 %564 }
 0x2ff   : > { %v567_v53 = vsel %vm459_vm5, %v565_v52, 0.0 }
 0x300   : > { %568 = vadd.xlane.f32.xlu2 %v567_v53 }
 0x307   : > { %v559_v54 = vpop.permute.xlu1 %558 }
 0x308   : > { %v561_v55 = vmul.f32 %v559_v54, %v869_v0 }
 0x30a   : > { %v562_v56 = vadd.f32 %v561_v55, %v553_v49 }
 0x373   : > { %v569_v57 = vpop.xlane.xlu2 %568 }
 0x374   : > { %v570_v58 = vsel %vm459_vm5, %v562_v56, %v569_v57 }
 0x375   : > { %v572_v59 = vsel %vm571_vm8, %v570_v58, 0.0 }
 0x376   : > { %573 = vst [vmem:[%s134_s3] sm:$0xff] %v572_v59 }
 0x377   : > { %754 = shalt.err (!%p751_p3)
}
 0x378   : > { %669 = dma.vmem_to_hbm [thread:$0]  (%p854_p5), %s588_s4, 128, %s590_s5, %s575_s13  }
 0x379 PF: > { %p675_p4 = scmp.ge.s32.totalorder %s789_s12, 2  ;;  %s601_s22 = sand.u32 1, %s777_s9  }
 0x37a   : > { %s602_s23 = scalar_lea.sflag [#allocation3], %s601_s22 }
 0x37b   : > { %p672_p7 = pnand %p675_p4, %p858_p6 }
 0x37d   : > { %p673_p8 = pneg %p672_p7 }
 0x37f   : > { %772 = dma.done.wait (%p673_p8), %s602_s23, 128  }
 0x380   : > { %774 = vsyncadd (%p673_p8), %s602_s23, 4294967168  ;;  %p12_p9 = scmp.ge.s32.totalorder %s841_s15, 4   ;;  %s1014_s9 = smov %s781_s10 }
 0x381   : > { %s1015_s10 = smov %s785_s11  ;;  %s1016_s11 = smov %s852_s18 }
 0x382   : > { %s1017_s12 = smov %s841_s15  ;;  %14 = sbr.rel (!%p12_p9) target bundleno = 3 (0x3), region = 63 }
 0x387   :  { %608 = vsyncpa [#allocation3], 1 }
 0x388   :  { %610 = vsyncpa [#allocation3 + $0x1], 1 }

</bundles_post_ra>
